<compile_context>
chip_gen: v7x
topology: tpu7x:2x2x1
jax: 0.10.0
libtpu: 0.0.40
codegen_flags: <defaults>
</compile_context>

<pallas_src>
import jax
import jax.numpy as jnp
from jax.experimental import pallas as pl
from jax.experimental.pallas import tpu as pltpu

_LANE = 128


def _round_up(n, m):
    return ((n + m - 1) // m) * m


def _make_mlp_kernel(n_layers, compute_dtype):
    """Fused N-layer Linear+ReLU kernel.

    refs = (x, w0, b0, w1, b1, ..., w_{n-1}, b_{n-1}, out)
    """

    def kernel(*refs):
        x_ref = refs[0]
        o_ref = refs[-1]
        h = x_ref[...].astype(compute_dtype)
        for l in range(n_layers):
            w_ref = refs[1 + 2 * l]
            b_ref = refs[2 + 2 * l]
            # MXU matmul: compute_dtype operands, f32 accumulation.
            acc = jnp.dot(h, w_ref[...], preferred_element_type=jnp.float32)
            # Bias-add + ReLU epilogue in f32 (VPU; v5e-safe).
            acc = jnp.maximum(acc + b_ref[...], 0.0)
            # Cast back to compute_dtype for the next MXU op; keep f32 on the
            # final layer so the output store is exact.
            h = acc if l == n_layers - 1 else acc.astype(compute_dtype)
        o_ref[...] = h.astype(o_ref.dtype)

    return kernel


def init_mlp_params(key, input_dim, hidden_shapes, dtype=jnp.float32):
    """Deterministic synthetic init (stands in for init.basic_init).

    Weights stored as (in_features, out_features) = transpose of nn.Linear's
    weight, so the kernel does x @ W directly.
    """
    params = []
    in_dim = input_dim
    for h in hidden_shapes:
        key, kw, kb = jax.random.split(key, 3)
        bound = 1.0 / (in_dim ** 0.5)
        w = jax.random.uniform(kw, (in_dim, h), dtype, -bound, bound)
        b = jax.random.uniform(kb, (h,), dtype, -bound, bound)
        params.append((w, b))
        in_dim = h
    return params


def prepare_params(params, compute_dtype=jnp.float32):
    """Pad every layer's output-feature dim up to a lane multiple (128) and
    store weights in the MXU compute dtype.  Returns (padded_params,
    true_output_dim)."""
    padded = []
    in_pad = params[0][0].shape[0]  # first layer's input dim stays unpadded
    for w, b in params:
        in_dim, out_dim = w.shape
        out_pad = _round_up(out_dim, _LANE)
        wp = jnp.zeros((in_pad, out_pad), compute_dtype)
        wp = wp.at[:in_dim, :out_dim].set(w.astype(compute_dtype))
        bp = jnp.zeros((1, out_pad), jnp.float32)
        bp = bp.at[:, :out_dim].set(b.astype(jnp.float32).reshape(1, -1))
        padded.append((wp, bp))
        in_pad = out_pad  # next layer consumes the padded activations
    return padded, params[-1][0].shape[1]


def mlp_base_forward(x, padded_params, out_dim, *, tb=256,
                     compute_dtype=jnp.float32):
    """Fused MLPBase forward: ReLU(...ReLU(x @ W1 + b1)... @ Wn + bn)."""
    B, d_in = x.shape
    n_layers = len(padded_params)
    h_last = padded_params[-1][0].shape[1]  # lane-padded output width

    # Batch tiling: sublane-align the tile and round B up so every block is
    # full (no partial / masked tiles).
    tb = min(tb, _round_up(B, 8))
    tb = _round_up(tb, 8)
    b_pad = _round_up(B, tb)
    if b_pad != B:
        x = jnp.pad(x, ((0, b_pad - B), (0, 0)))
    grid = (b_pad // tb,)

    in_specs = [pl.BlockSpec((tb, d_in), lambda i: (i, 0))]
    operands = [x]
    for w, b in padded_params:
        kin, kout = w.shape
        # Weights/biases: same block every grid step -> VMEM-resident.
        in_specs.append(pl.BlockSpec((kin, kout), lambda i: (0, 0)))
        in_specs.append(pl.BlockSpec((1, kout), lambda i: (0, 0)))
        operands.append(w)
        operands.append(b)

    out = pl.pallas_call(
        _make_mlp_kernel(n_layers, compute_dtype),
        out_shape=jax.ShapeDtypeStruct((b_pad, h_last), jnp.float32),
        grid=grid,
        in_specs=in_specs,
        out_specs=pl.BlockSpec((tb, h_last), lambda i: (i, 0)),
        compiler_params=pltpu.CompilerParams(
            dimension_semantics=("parallel",)),
    )(*operands)

    return out[:B, :out_dim]


def mlp_base_reference(x, params, compute_dtype=jnp.float32):
    """Plain-JAX reference of the PyTorch forward (for correctness check)."""
    h = x
    for (w, b) in params:
        y = jnp.dot(h.astype(compute_dtype), w.astype(compute_dtype),
                    preferred_element_type=jnp.float32)
        h = jnp.maximum(y + b.astype(jnp.float32), 0.0)
    return h


if __name__ == "__main__":
    key = jax.random.PRNGKey(0)
    kx, kp = jax.random.split(key)

    # MLPBase(input_shape=16, hidden_shapes=[32, 32]); batch big enough to
    # exercise batch tiling (tb=128 -> grid of 2 parallel batch tiles).
    B, D_in = 256, 16
    hidden_shapes = [32, 32]

    x = jax.random.normal(kx, (B, D_in), jnp.float32)
    params = init_mlp_params(kp, D_in, hidden_shapes)

    # f32 MXU path (closest to the PyTorch f32 semantics).
    pad_f32, out_dim = prepare_params(params, jnp.float32)
    out = mlp_base_forward(x, pad_f32, out_dim, tb=128,
                           compute_dtype=jnp.float32)
    out = jax.block_until_ready(out)
    ref = mlp_base_reference(x, params, jnp.float32)
    assert out.shape == (B, hidden_shapes[-1])
    assert jnp.allclose(out, ref, atol=1e-5, rtol=1e-5), "f32 mismatch vs reference"

    # bf16 MXU path (v6e/v7x sweet spot): bf16 operands, f32 accumulation,
    # f32 epilogue.  Compared against a reference using the same bf16 cast.
    pad_bf16, out_dim = prepare_params(params, jnp.bfloat16)
    out_bf = mlp_base_forward(x, pad_bf16, out_dim, tb=128,
                              compute_dtype=jnp.bfloat16)
    out_bf = jax.block_until_ready(out_bf)
    ref_bf = mlp_base_reference(x, params, jnp.bfloat16)
    assert out_bf.shape == (B, hidden_shapes[-1])
    assert jnp.allclose(out_bf, ref_bf, atol=2e-2, rtol=2e-2), "bf16 mismatch vs reference"

    print("KERNEL_OK")
</pallas_src>

<mosaic_0001>
module attributes {stable_mosaic.version = 11 : i64} {
  func.func @kernel(%arg0: i32, %arg1: memref<128x16xf32, #tpu.memory_space<vmem>>, %arg2: memref<16x128xf32, #tpu.memory_space<vmem>>, %arg3: memref<1x128xf32, #tpu.memory_space<vmem>>, %arg4: memref<128x128xf32, #tpu.memory_space<vmem>>, %arg5: memref<1x128xf32, #tpu.memory_space<vmem>>, %arg6: memref<128x128xf32, #tpu.memory_space<vmem>>) attributes {dimension_semantics = [#tpu.dimension_semantics<parallel>], iteration_bounds = array<i64: 2>, scalar_prefetch = 0 : i64, scratch_operands = 0 : i64, tpu.core_type = #tpu.core_type<tc>, window_params = [{transform_indices = @transform_0, window_bounds = array<i64: 128, 16>}, {pipeline_mode = #tpu.pipeline_mode<synchronous>, transform_indices = @transform_1, window_bounds = array<i64: 16, 128>}, {pipeline_mode = #tpu.pipeline_mode<synchronous>, transform_indices = @transform_2, window_bounds = array<i64: 1, 128>}, {pipeline_mode = #tpu.pipeline_mode<synchronous>, transform_indices = @transform_3, window_bounds = array<i64: 128, 128>}, {pipeline_mode = #tpu.pipeline_mode<synchronous>, transform_indices = @transform_4, window_bounds = array<i64: 1, 128>}, {transform_indices = @transform_5, window_bounds = array<i64: 128, 128>}]} {
    %c0 = arith.constant 0 : index
    %c0_0 = arith.constant 0 : index
    %0 = vector.load %arg1[%c0, %c0_0] : memref<128x16xf32, #tpu.memory_space<vmem>>, vector<128x16xf32>
    %c0_1 = arith.constant 0 : index
    %c0_2 = arith.constant 0 : index
    %1 = vector.load %arg2[%c0_1, %c0_2] : memref<16x128xf32, #tpu.memory_space<vmem>>, vector<16x128xf32>
    %cst = arith.constant dense<0.000000e+00> : vector<128x128xf32>
    %2 = tpu.matmul %0, %1, %cst {dimension_numbers = #tpu.dot_dimension_numbers<[1], [0], [0], [1], [0, 0, 1, 1], [], []>} : vector<128x16xf32>, vector<16x128xf32>, vector<128x128xf32> -> vector<128x128xf32>
    %c0_3 = arith.constant 0 : index
    %c0_4 = arith.constant 0 : index
    %3 = vector.load %arg3[%c0_3, %c0_4] : memref<1x128xf32, #tpu.memory_space<vmem>>, vector<1x128xf32>
    %4 = vector.broadcast %3 : vector<1x128xf32> to vector<128x128xf32>
    %5 = arith.addf %2, %4 : vector<128x128xf32>
    %cst_5 = arith.constant 0.000000e+00 : f32
    %6 = vector.broadcast %cst_5 : f32 to vector<128x128xf32>
    %7 = arith.maximumf %5, %6 : vector<128x128xf32>
    %c0_6 = arith.constant 0 : index
    %c0_7 = arith.constant 0 : index
    %8 = vector.load %arg4[%c0_6, %c0_7] : memref<128x128xf32, #tpu.memory_space<vmem>>, vector<128x128xf32>
    %cst_8 = arith.constant dense<0.000000e+00> : vector<128x128xf32>
    %9 = tpu.matmul %7, %8, %cst_8 {dimension_numbers = #tpu.dot_dimension_numbers<[1], [0], [0], [1], [0, 0, 1, 1], [], []>} : vector<128x128xf32>, vector<128x128xf32>, vector<128x128xf32> -> vector<128x128xf32>
    %c0_9 = arith.constant 0 : index
    %c0_10 = arith.constant 0 : index
    %10 = vector.load %arg5[%c0_9, %c0_10] : memref<1x128xf32, #tpu.memory_space<vmem>>, vector<1x128xf32>
    %11 = vector.broadcast %10 : vector<1x128xf32> to vector<128x128xf32>
    %12 = arith.addf %9, %11 : vector<128x128xf32>
    %cst_11 = arith.constant 0.000000e+00 : f32
    %13 = vector.broadcast %cst_11 : f32 to vector<128x128xf32>
    %14 = arith.maximumf %12, %13 : vector<128x128xf32>
    %c0_12 = arith.constant 0 : index
    %c0_13 = arith.constant 0 : index
    %15 = vector.load %arg6[%c0_12, %c0_13] : memref<128x128xf32, #tpu.memory_space<vmem>>, vector<128x128xf32>
    tpu.vector_store %arg6[%c0_12, %c0_13], %14 {strides = array<i32>} : memref<128x128xf32, #tpu.memory_space<vmem>>, vector<128x128xf32>,
    return
  }
  func.func @transform_0(%arg0: i32) -> (i32, i32) {
    %c0_i32 = arith.constant 0 : i32
    %c0_i32_0 = arith.constant 0 : i32
    return %arg0, %c0_i32 : i32, i32
  }
  func.func @transform_1(%arg0: i32) -> (i32, i32) {
    %c0_i32 = arith.constant 0 : i32
    %c0_i32_0 = arith.constant 0 : i32
    %c0_i32_1 = arith.constant 0 : i32
    return %c0_i32, %c0_i32_0 : i32, i32
  }
  func.func @transform_2(%arg0: i32) -> (i32, i32) {
    %c0_i32 = arith.constant 0 : i32
    %c0_i32_0 = arith.constant 0 : i32
    %c0_i32_1 = arith.constant 0 : i32
    return %c0_i32, %c0_i32_0 : i32, i32
  }
  func.func @transform_3(%arg0: i32) -> (i32, i32) {
    %c0_i32 = arith.constant 0 : i32
    %c0_i32_0 = arith.constant 0 : i32
    %c0_i32_1 = arith.constant 0 : i32
    return %c0_i32, %c0_i32_0 : i32, i32
  }
  func.func @transform_4(%arg0: i32) -> (i32, i32) {
    %c0_i32 = arith.constant 0 : i32
    %c0_i32_0 = arith.constant 0 : i32
    %c0_i32_1 = arith.constant 0 : i32
    return %c0_i32, %c0_i32_0 : i32, i32
  }
  func.func @transform_5(%arg0: i32) -> (i32, i32) {
    %c0_i32 = arith.constant 0 : i32
    %c0_i32_0 = arith.constant 0 : i32
    return %arg0, %c0_i32 : i32, i32
  }
}

</mosaic_0001>

<bundles_post_ra>
// kernel: tpu_custom_call.1
= control target key start
LH: loop header
LB: loop body
LE: loop exit
PB: predicated region body
PF: predicated region fallthrough
CT: control target
= control target key end

     0   :  { %10 = vsyncpa [#allocation3], 0  ;;  %s1329_s0 = inlined_call_operand.vmem [shape: f32[256,16], index: 0, kind: input, shape index: {}]   ;;  %s1330_s1 = inlined_call_operand.vmem [shape: f32[16,128], index: 1, kind: input, shape index: {}]   ;;  %s1331_s2 = inlined_call_operand.vmem [shape: f32[1,128], index: 2, kind: input, shape index: {}]   ;;  %s1332_s3 = inlined_call_operand.vmem [shape: f32[128,128], index: 3, kind: input, shape index: {}]   ;;  %s1333_s4 = inlined_call_operand.vmem [shape: f32[1,128], index: 4, kind: input, shape index: {}]   ;;  %s1334_s5 = inlined_call_operand.hbm [shape: f32[256,128], index: 5, kind: output, shape index: {}]  }
   0x1   :  { %12 = vsyncpa [#allocation3 + $0x1], 0  ;;  %s1092_s18 = smov 0   ;;  %s1094_s19 = smov 0  }
   0x2   :  { %s1096_s20 = smov 0   ;;  %s1098_s21 = smov 0  }
   0x3 LB: > { %s1113_s22 = sadd.s32 4294967295, %s1057_s21   ;;  %s737_s23 = sadd.s32 4294967294, %s1057_s21   ;;  %s1057_s21 = sphi %s1098_s21, %s1340_s21   ;;  %s1053_s20 = sphi %s1096_s20, %s1339_s20   ;;  %s1049_s19 = sphi %s1094_s19, %s1338_s19   ;;  %s1045_s18 = sphi %s1092_s18, %s1337_s18  }
   0x4   : > { %s1117_s24 = sadd.s32 1, %s1057_s21   ;;  %s135_s25 = sadd.s32 1, %s1053_s20 }
   0x5   : > { %s132_s26 = ssub.s32 %s1057_s21, %s1117_s24  ;;  %p145_p0 = scmp.ne.s32.totalorder %s1053_s20, %s1049_s19 }
   0x6   : > { %p133_p1 = scmp.eq.s32.totalorder %s132_s26, 0  ;;  %p146_p2 = scmp.eq.s32.totalorder %s1113_s22, 1 }
   0x7   : > { %p151_p3 = scmp.ne.s32.totalorder %s1049_s19, %s1045_s18  ;;  %p152_p4 = scmp.eq.s32.totalorder %s737_s23, 1 }
   0x8   : > { %s1128_s27 = scalar_select %p133_p1, %s1053_s20, %s135_s25  }
   0x9   : > { %p1130_p5 = por %p146_p2, %p145_p0  ;;  %p1134_p6 = por %p152_p4, %p151_p3 }
   0xa   : > { %p740_p7 = scmp.ge.s32.totalorder %s1057_s21, 1  ;;  %p191_p8 = scmp.lt.s32.totalorder %s1057_s21, 3 }
   0xc   : > { %p192_p9 = pnand %p740_p7, %p191_p8 }
   0xd   : > { %v242_v0 = vld [vmem:[%s1330_s1] sm:$0xff] (!%p192_p9)  ;;  %v243_v1 = vld [vmem:[%s1330_s1 + $0x8] sm:$0xff] (!%p192_p9)  ;;  %s742_s9 = sshll.u32 (!%p192_p9), %s1113_s22, 4  ;;  %v463_v5 = vld [vmem:[%s1332_s3 + $0x10] sm:$0xff] (!%p192_p9)  ;;  %vm251_vm0 = vcmask (!%p192_p9), 130048   ;;  %s767_s6 = sshll.u32 (!%p192_p9), %s1113_s22, 11 }
   0xe   : > { %195 = sbr.rel (%p192_p9) target bundleno = 504 (0x1f8), region = 40  ;;  %v461_v2 = vld [vmem:[%s1332_s3] sm:$0xff] (!%p192_p9)  ;;  %v902_v3 = vpack.c.bf16 (!%p192_p9), %v243_v1, %v242_v0  ;;  %p220_p10 = scmp.lt.s32.totalorder (!%p192_p9), %s742_s9, 31  ;;  %v462_v4 = vld [vmem:[%s1332_s3 + $0x8] sm:$0xff] (!%p192_p9)  ;;  %v464_v6 = vld [vmem:[%s1332_s3 + $0x18] sm:$0xff] (!%p192_p9) }
   0xf   : > { %v906_v7 = vpack.c.bf16 (!%p192_p9), %v462_v4, %v461_v2  ;;  %v910_v8 = vpack.c.bf16 (!%p192_p9), %v464_v6, %v463_v5  ;;  %v465_v9 = vld [vmem:[%s1332_s3 + $0x20] sm:$0xff] (!%p192_p9)  ;;  %v466_v10 = vld [vmem:[%s1332_s3 + $0x28] sm:$0xff] (!%p192_p9)  ;;  %v467_v16 = vld [vmem:[%s1332_s3 + $0x30] sm:$0xff] (!%p192_p9)  ;;  %s1059_s12 = smov (!%p192_p9), [#allocation2]  }
  0x10   : > { %903 = vmatprep.subr.bf16.mxu0 (!%p192_p9), %v902_v3  ;;  %v914_v14 = vpack.c.bf16 (!%p192_p9), %v466_v10, %v465_v9  ;;  %v468_v17 = vld [vmem:[%s1332_s3 + $0x38] sm:$0xff] (!%p192_p9)  ;;  %v469_v21 = vld [vmem:[%s1332_s3 + $0x40] sm:$0xff] (!%p192_p9)  ;;  %v470_v22 = vld [vmem:[%s1332_s3 + $0x48] sm:$0xff] (!%p192_p9)  ;;  %s999_s13 = sshll.u32 (!%p192_p9), %s1059_s12, 4  ;;  %s1000_s13 = int_to_ptr.vmem [resolvable:$false] %s999_s13 }
  0x11   : > { %905 = vmatpush3.bf16.msra.mxu0 (!%p192_p9), %v902_v3  ;;  %938 = vmatprep.subr.bf16.mxu1 (!%p192_p9), %v906_v7  ;;  %v918_v19 = vpack.c.bf16 (!%p192_p9), %v468_v17, %v467_v16  ;;  %v922_v24 = vpack.c.bf16 (!%p192_p9), %v470_v22, %v469_v21  ;;  %v471_v26 = vld [vmem:[%s1332_s3 + $0x50] sm:$0xff] (!%p192_p9)  ;;  %v472_v27 = vld [vmem:[%s1332_s3 + $0x58] sm:$0xff] (!%p192_p9)  ;;  %v473_v31 = vld [vmem:[%s1332_s3 + $0x60] sm:$0xff] (!%p192_p9)  ;;  %s1001_s14 = scalar_lea.vmem (!%p192_p9), %s1000_s13, 4096 }
  0x12   : > { %907 = vmatprep.subr.bf16.mxu0 (!%p192_p9), %v906_v7  ;;  %946 = vmatpush3.bf16.msra.mxu1 (!%p192_p9), %v906_v7  ;;  %v926_v29 = vpack.c.bf16 (!%p192_p9), %v472_v27, %v471_v26  ;;  %v474_v32 = vld [vmem:[%s1332_s3 + $0x68] sm:$0xff] (!%p192_p9)  ;;  %v475_v40 = vld [vmem:[%s1332_s3 + $0x70] sm:$0xff] (!%p192_p9)  ;;  %v476_v41 = vld [vmem:[%s1332_s3 + $0x78] sm:$0xff] (!%p192_p9) }
  0x13   : > { %939 = vmatprep.subr.bf16.mxu1 (!%p192_p9), %v910_v8  ;;  %v930_v34 = vpack.c.bf16 (!%p192_p9), %v474_v32, %v473_v31  ;;  %v934_v42 = vpack.c.bf16 (!%p192_p9), %v476_v41, %v475_v40  ;;  %v744_v43 = vld [vmem:[%s1331_s2] ss:$0 sm:$0xff] (!%p192_p9) }
  0x15   : > { %s1342_s9 = smov (!%p220_p10, %s742_s9), 31 }
  0x16   : > { %s743_s23 = sshll.u32 %s1342_s9, 3  ;;  %947 = vmatpush3.bf16.msra.mxu1 %v910_v8  ;;  %s1280_s9 = scalar_lea.hbm %s1334_s5, %s767_s6 }
  0x17   : > { %s1162_s30 = scalar_lea.vmem %s1329_s0, %s743_s23  ;;  %940 = vmatprep.subr.bf16.mxu1 %v914_v14 }
  0x18   : > { %v226_v11 = vld [vmem:[%s1162_s30] sm:$0xff]  ;;  %v227_v12 = vld [vmem:[%s1162_s30 + $0x8] sm:$0xff]  ;;  %v228_v13 = vld [vmem:[%s1162_s30 + $0x10] sm:$0xff] }
  0x19   : > { %822 = vmatprep.mubr.msk.f32.mxu0 %vm251_vm0, %v226_v11  ;;  %v229_v15 = vld [vmem:[%s1162_s30 + $0x18] sm:$0xff]  ;;  %v230_v18 = vld [vmem:[%s1162_s30 + $0x20] sm:$0xff]  ;;  %v231_v20 = vld [vmem:[%s1162_s30 + $0x28] sm:$0xff] }
  0x1a   : > { %823 = vmatmul.mubr.msk.f32.vlgmr.msra.gmra.mrb[0].mxu0 %vm251_vm0, %v227_v12  ;;  %948 = vmatpush3.bf16.msra.mxu1 %v914_v14  ;;  %v232_v23 = vld [vmem:[%s1162_s30 + $0x30] sm:$0xff]  ;;  %v233_v25 = vld [vmem:[%s1162_s30 + $0x38] sm:$0xff]  ;;  %v234_v28 = vld [vmem:[%s1162_s30 + $0x40] sm:$0xff] }
  0x1b   : > { %825 = vmatprep.mubr.msk.f32.mxu0 %vm251_vm0, %v228_v13  ;;  %909 = vmatpush3.bf16.msra.mxu0 %v906_v7  ;;  %v235_v30 = vld [vmem:[%s1162_s30 + $0x48] sm:$0xff]  ;;  %v236_v33 = vld [vmem:[%s1162_s30 + $0x50] sm:$0xff]  ;;  %v237_v35 = vld [vmem:[%s1162_s30 + $0x58] sm:$0xff] }
  0x1c   : > { %911 = vmatprep.subr.bf16.mxu0 %v910_v8  ;;  %941 = vmatprep.subr.bf16.mxu1 %v918_v19  ;;  %v238_v36 = vld [vmem:[%s1162_s30 + $0x60] sm:$0xff]  ;;  %v239_v37 = vld [vmem:[%s1162_s30 + $0x68] sm:$0xff]  ;;  %v240_v38 = vld [vmem:[%s1162_s30 + $0x70] sm:$0xff] }
  0x1d   : > { %v241_v39 = vld [vmem:[%s1162_s30 + $0x78] sm:$0xff]  ;;  %s216_s30 = sand.u32 1, %s1049_s19  }
  0x1e   : > { %826 = vmatmul.mubr.msk.f32.gmra.mrb[2].mxu0 %vm251_vm0, %v229_v15  ;;  %949 = vmatpush3.bf16.msra.mxu1 %v918_v19  ;;  %s741_s25 = sshll.u32 %s216_s30, 7  ;;  %s1288_s22 = scalar_lea.sflag [#allocation3], %s216_s30 }
  0x1f   : > { %828 = vmatprep.mubr.msk.f32.mxu0 %vm251_vm0, %v230_v18  ;;  %913 = vmatpush3.bf16.msra.mxu0 %v910_v8  ;;  %s1245_s26 = scalar_lea.vmem [#allocation2], %s741_s25 }
  0x20   : > { %915 = vmatprep.subr.bf16.mxu0 %v914_v14  ;;  %942 = vmatprep.subr.bf16.mxu1 %v922_v24  ;;  %s675_s7 = sshll.u32 %s1245_s26, 4  ;;  %s1282_s7 = int_to_ptr.vmem [resolvable:$true] %s675_s7 }
  0x21   : > { %s995_s11 = scalar_lea.vmem %s1282_s7, 2048  ;;  %p1002_p0 = scmp.lt.s32.totalorder %s1282_s7, %s1000_s13 }
  0x22   : > { %829 = vmatmul.mubr.msk.f32.gmra.mrb[4].mxu0 %vm251_vm0, %v231_v20  ;;  %950 = vmatpush3.bf16.msra.mxu1 %v922_v24  ;;  %p996_p11 = scmp.ne.s32.totalorder %s1282_s7, %s995_s11  ;;  %p1003_p1 = scmp.lt.s32.totalorder %s1001_s14, %s995_s11 }
  0x23   : > { %831 = vmatprep.mubr.msk.f32.mxu0 %vm251_vm0, %v232_v23  ;;  %917 = vmatpush3.bf16.msra.mxu0 %v914_v14 }
  0x24   : > { %919 = vmatprep.subr.bf16.mxu0 %v918_v19  ;;  %943 = vmatprep.subr.bf16.mxu1 %v926_v29  ;;  %p997_p12 = pnand %p996_p11, %p1130_p5  ;;  %p1004_p2 = por %p1003_p1, %p1002_p0 }
  0x26   : > { %832 = vmatmul.mubr.msk.f32.gmra.mrb[6].mxu0 %vm251_vm0, %v233_v25  ;;  %951 = vmatpush3.bf16.msra.mxu1 %v926_v29  ;;  %p998_p13 = pneg %p997_p12 }
  0x27   : > { %834 = vmatprep.mubr.msk.f32.mxu0 %vm251_vm0, %v234_v28  ;;  %921 = vmatpush3.bf16.msra.mxu0 %v918_v19  ;;  %v1239_v28 = vld [vmem:[%s1333_s4] ss:$0 sm:$0xff] }
  0x28   : > { %923 = vmatprep.subr.bf16.mxu0 %v922_v24  ;;  %944 = vmatprep.subr.bf16.mxu1 %v930_v34  ;;  %p1005_p3 = pnand %p1004_p2, %p998_p13 }
  0x2a   : > { %835 = vmatmul.mubr.msk.f32.gmra.mrb[8].mxu0 %vm251_vm0, %v235_v30  ;;  %952 = vmatpush3.bf16.msra.mxu1 %v930_v34 }
  0x2b   : > { %837 = vmatprep.mubr.msk.f32.mxu0 %vm251_vm0, %v236_v33  ;;  %925 = vmatpush3.bf16.msra.mxu0 %v922_v24 }
  0x2c   : > { %927 = vmatprep.subr.bf16.mxu0 %v926_v29  ;;  %945 = vmatprep.subr.bf16.mxu1 %v934_v42 }
  0x2e   : > { %838 = vmatmul.mubr.msk.f32.gmra.mrb[10].mxu0 %vm251_vm0, %v237_v35  ;;  %953 = vmatpush3.bf16.msra.mxu1 %v934_v42 }
  0x2f   : > { %840 = vmatprep.mubr.msk.f32.mxu0 %vm251_vm0, %v238_v36  ;;  %929 = vmatpush3.bf16.msra.mxu0 %v926_v29 }
  0x30   : > { %931 = vmatprep.subr.bf16.mxu0 %v930_v34 }
  0x32   : > { %841 = vmatmul.mubr.msk.f32.gmra.mrb[12].mxu0 %vm251_vm0, %v239_v37 }
  0x33   : > { %843 = vmatprep.mubr.msk.f32.mxu0 %vm251_vm0, %v240_v38  ;;  %933 = vmatpush3.bf16.msra.mxu0 %v930_v34 }
  0x34   : > { %935 = vmatprep.subr.bf16.mxu0 %v934_v42 }
  0x36   : > { %844 = vmatmul.mubr.msk.f32.gmra.mrb[14].mxu0 %vm251_vm0, %v241_v39 }
  0x37   : > { %937 = vmatpush3.bf16.msra.mxu0 %v934_v42 }
  0xed   : > { %v824_v44 = vpop.f32.mrb[0].mxu0 }
  0xee   : > { %v372_v45 = vadd.f32 %v824_v44, %v744_v43  ;;  %v366_v46 = vpop.f32.mrb[1].mxu0 }
  0xef   : > { %v367_v47 = vadd.f32 %v744_v43, %v366_v46 }
  0xf0   : > { %v446_v50 = vmax.f32 %v372_v45, 0.0 }
  0xf1   : > { %v445_v48 = vmax.f32 %v367_v47, 0.0  ;;  %v827_v49 = vpop.f32.mrb[2].mxu0 }
  0xf2   : > { %v382_v51 = vadd.f32 %v827_v49, %v744_v43  ;;  %v376_v52 = vpop.f32.mrb[3].mxu0 }
  0xf3   : > { %v377_v53 = vadd.f32 %v744_v43, %v376_v52  ;;  %878 = vmatprep.mubr.f32.mxu0 %v445_v48 }
  0xf4   : > { %879 = vmatmul.mubr.f32.vlgmr.msra.gmra.mrb[16].mxu0 %v446_v50  ;;  %v448_v56 = vmax.f32 %v382_v51, 0.0 }
  0xf5   : > { %v447_v54 = vmax.f32 %v377_v53, 0.0  ;;  %v830_v55 = vpop.f32.mrb[4].mxu0 }
  0xf6   : > { %v392_v57 = vadd.f32 %v830_v55, %v744_v43  ;;  %v386_v58 = vpop.f32.mrb[5].mxu0 }
  0xf7   : > { %v387_v59 = vadd.f32 %v744_v43, %v386_v58  ;;  %881 = vmatprep.mubr.f32.mxu0 %v447_v54 }
  0xf8   : > { %882 = vmatmul.mubr.f32.gmra.mrb[18].mxu0 %v448_v56  ;;  %v450_v62 = vmax.f32 %v392_v57, 0.0 }
  0xf9   : > { %v449_v60 = vmax.f32 %v387_v59, 0.0  ;;  %v833_v61 = vpop.f32.mrb[6].mxu0 }
  0xfa   : > { %v402_v63 = vadd.f32 %v833_v61, %v744_v43  ;;  %v396_v0 = vpop.f32.mrb[7].mxu0 }
  0xfb   : > { %884 = vmatprep.mubr.f32.mxu0 %v449_v60  ;;  %v397_v1 = vadd.f32 %v744_v43, %v396_v0 }
  0xfc   : > { %885 = vmatmul.mubr.f32.gmra.mrb[20].mxu0 %v450_v62  ;;  %v452_v4 = vmax.f32 %v402_v63, 0.0 }
  0xfd   : > { %v836_v2 = vpop.f32.mrb[8].mxu0  ;;  %v451_v3 = vmax.f32 %v397_v1, 0.0 }
  0xfe   : > { %v412_v5 = vadd.f32 %v836_v2, %v744_v43  ;;  %v406_v6 = vpop.f32.mrb[9].mxu0 }
  0xff   : > { %v407_v7 = vadd.f32 %v744_v43, %v406_v6  ;;  %887 = vmatprep.mubr.f32.mxu1 %v451_v3 }
 0x100   : > { %888 = vmatmul.mubr.f32.vlgmr.msra.gmra.mrb[0].mxu1 %v452_v4  ;;  %v454_v10 = vmax.f32 %v412_v5, 0.0 }
 0x101   : > { %v453_v8 = vmax.f32 %v407_v7, 0.0  ;;  %v839_v9 = vpop.f32.mrb[10].mxu0 }
 0x102   : > { %v422_v11 = vadd.f32 %v839_v9, %v744_v43  ;;  %v416_v12 = vpop.f32.mrb[11].mxu0 }
 0x103   : > { %v417_v13 = vadd.f32 %v744_v43, %v416_v12  ;;  %890 = vmatprep.mubr.f32.mxu1 %v453_v8 }
 0x104   : > { %891 = vmatmul.mubr.f32.gmra.mrb[2].mxu1 %v454_v10  ;;  %v456_v16 = vmax.f32 %v422_v11, 0.0 }
 0x105   : > { %v455_v14 = vmax.f32 %v417_v13, 0.0  ;;  %v842_v15 = vpop.f32.mrb[12].mxu0 }
 0x106   : > { %v432_v17 = vadd.f32 %v842_v15, %v744_v43  ;;  %v426_v18 = vpop.f32.mrb[13].mxu0 }
 0x107   : > { %v427_v19 = vadd.f32 %v744_v43, %v426_v18  ;;  %893 = vmatprep.mubr.f32.mxu1 %v455_v14 }
 0x108   : > { %894 = vmatmul.mubr.f32.gmra.mrb[4].mxu1 %v456_v16  ;;  %v458_v22 = vmax.f32 %v432_v17, 0.0 }
 0x109   : > { %v457_v20 = vmax.f32 %v427_v19, 0.0  ;;  %v845_v21 = vpop.f32.mrb[14].mxu0 }
 0x10a   : > { %v442_v23 = vadd.f32 %v845_v21, %v744_v43  ;;  %v436_v24 = vpop.f32.mrb[15].mxu0 }
 0x10b   : > { %v437_v25 = vadd.f32 %v744_v43, %v436_v24  ;;  %896 = vmatprep.mubr.f32.mxu1 %v457_v20 }
 0x10c   : > { %897 = vmatmul.mubr.f32.gmra.mrb[6].mxu1 %v458_v22  ;;  %v460_v27 = vmax.f32 %v442_v23, 0.0 }
 0x10d   : > { %v459_v26 = vmax.f32 %v437_v25, 0.0 }
 0x10f   : > { %899 = vmatprep.mubr.f32.mxu1 %v459_v26 }
 0x110   : > { %900 = vmatmul.mubr.f32.gmra.mrb[8].mxu1 %v460_v27 }
 0x1c7   : > { %v880_v29 = vpop.f32.mrb[16].mxu0 }
 0x1c8   : > { %v556_v30 = vadd.f32 %v880_v29, %v1239_v28  ;;  %v550_v31 = vpop.f32.mrb[17].mxu0 }
 0x1c9   : > { %v551_v32 = vadd.f32 %v1239_v28, %v550_v31 }
 0x1ca   : > { %v630_v33 = vmax.f32 %v556_v30, 0.0 }
 0x1cb   : > { %v629_v34 = vmax.f32 %v551_v32, 0.0  ;;  %v883_v35 = vpop.f32.mrb[18].mxu0 }
 0x1cc   : > { %646 = vst [vmem:[%s1245_s26 + $0x8] sm:$0xff] %v630_v33  ;;  %v566_v36 = vadd.f32 %v883_v35, %v1239_v28  ;;  %v560_v37 = vpop.f32.mrb[19].mxu0 }
 0x1cd   : > { %645 = vst [vmem:[%s1245_s26] sm:$0xff] %v629_v34  ;;  %v561_v38 = vadd.f32 %v1239_v28, %v560_v37 }
 0x1ce   : > { %v632_v39 = vmax.f32 %v566_v36, 0.0 }
 0x1cf   : > { %v631_v40 = vmax.f32 %v561_v38, 0.0  ;;  %v886_v41 = vpop.f32.mrb[20].mxu0 }
 0x1d0   : > { %648 = vst [vmem:[%s1245_s26 + $0x18] sm:$0xff] %v632_v39  ;;  %v576_v42 = vadd.f32 %v886_v41, %v1239_v28  ;;  %v570_v43 = vpop.f32.mrb[21].mxu0 }
 0x1d1   : > { %647 = vst [vmem:[%s1245_s26 + $0x10] sm:$0xff] %v631_v40  ;;  %v571_v44 = vadd.f32 %v1239_v28, %v570_v43 }
 0x1d2   : > { %v634_v45 = vmax.f32 %v576_v42, 0.0 }
 0x1d3   : > { %v633_v46 = vmax.f32 %v571_v44, 0.0  ;;  %v889_v47 = vpop.f32.mrb[0].mxu1 }
 0x1d4   : > { %650 = vst [vmem:[%s1245_s26 + $0x28] sm:$0xff] %v634_v45  ;;  %v586_v48 = vadd.f32 %v889_v47, %v1239_v28  ;;  %v580_v49 = vpop.f32.mrb[1].mxu1 }
 0x1d5   : > { %649 = vst [vmem:[%s1245_s26 + $0x20] sm:$0xff] %v633_v46  ;;  %v581_v50 = vadd.f32 %v1239_v28, %v580_v49 }
 0x1d6   : > { %v636_v51 = vmax.f32 %v586_v48, 0.0 }
 0x1d7   : > { %v635_v52 = vmax.f32 %v581_v50, 0.0  ;;  %v892_v53 = vpop.f32.mrb[2].mxu1 }
 0x1d8   : > { %652 = vst [vmem:[%s1245_s26 + $0x38] sm:$0xff] %v636_v51  ;;  %v596_v54 = vadd.f32 %v892_v53, %v1239_v28  ;;  %v590_v55 = vpop.f32.mrb[3].mxu1 }
 0x1d9   : > { %651 = vst [vmem:[%s1245_s26 + $0x30] sm:$0xff] %v635_v52  ;;  %v591_v56 = vadd.f32 %v1239_v28, %v590_v55 }
 0x1da   : > { %v638_v57 = vmax.f32 %v596_v54, 0.0 }
 0x1db   : > { %v637_v58 = vmax.f32 %v591_v56, 0.0  ;;  %v895_v59 = vpop.f32.mrb[4].mxu1 }
 0x1dc   : > { %654 = vst [vmem:[%s1245_s26 + $0x48] sm:$0xff] %v638_v57  ;;  %v606_v60 = vadd.f32 %v895_v59, %v1239_v28  ;;  %v600_v61 = vpop.f32.mrb[5].mxu1 }
 0x1dd   : > { %653 = vst [vmem:[%s1245_s26 + $0x40] sm:$0xff] %v637_v58  ;;  %v601_v62 = vadd.f32 %v1239_v28, %v600_v61 }
 0x1de   : > { %v640_v63 = vmax.f32 %v606_v60, 0.0 }
 0x1df   : > { %v639_v0 = vmax.f32 %v601_v62, 0.0  ;;  %v898_v1 = vpop.f32.mrb[6].mxu1 }
 0x1e0   : > { %656 = vst [vmem:[%s1245_s26 + $0x58] sm:$0xff] %v640_v63  ;;  %v616_v2 = vadd.f32 %v898_v1, %v1239_v28  ;;  %v610_v3 = vpop.f32.mrb[7].mxu1 }
 0x1e1   : > { %655 = vst [vmem:[%s1245_s26 + $0x50] sm:$0xff] %v639_v0  ;;  %v611_v4 = vadd.f32 %v1239_v28, %v610_v3 }
 0x1e2   : > { %v642_v5 = vmax.f32 %v616_v2, 0.0 }
 0x1e3   : > { %v641_v6 = vmax.f32 %v611_v4, 0.0  ;;  %v901_v7 = vpop.f32.mrb[8].mxu1 }
 0x1e4   : > { %658 = vst [vmem:[%s1245_s26 + $0x68] sm:$0xff] %v642_v5  ;;  %v626_v8 = vadd.f32 %v901_v7, %v1239_v28  ;;  %v620_v9 = vpop.f32.mrb[9].mxu1 }
 0x1e5   : > { %657 = vst [vmem:[%s1245_s26 + $0x60] sm:$0xff] %v641_v6  ;;  %v621_v10 = vadd.f32 %v1239_v28, %v620_v9 }
 0x1e6   : > { %v644_v11 = vmax.f32 %v626_v8, 0.0 }
 0x1e7   : > { %v643_v12 = vmax.f32 %v621_v10, 0.0 }
 0x1e8   : > { %660 = vst [vmem:[%s1245_s26 + $0x78] sm:$0xff] %v644_v11 }
 0x1e9   : > { %659 = vst [vmem:[%s1245_s26 + $0x70] sm:$0xff] %v643_v12 }
 0x1ea   : > { %1008 = shalt.err (!%p1005_p3)
}
 0x1eb   : > { %s1009_s15 = scalar_lea.hbm %s1280_s9, 2048  ;;  %s1013_s17 = scalar_lea.hbm %s1334_s5, 4096 }
 0x1ec   : > { %p1010_p4 = scmp.ne.s32.totalorder %s1280_s9, %s1009_s15  ;;  %p1014_p9 = scmp.lt.u32.totalorder %s1280_s9, %s1334_s5 }
 0x1ed   : > { %p1015_p10 = scmp.lt.u32.totalorder %s1013_s17, %s1009_s15  ;;  %p1017_p12 = scmp.lt.u32.totalorder %s1009_s15, %s1280_s9 }
 0x1ee   : > { %p1011_p7 = pnand %p1010_p4, %p1130_p5 }
 0x1ef   : > { %p1016_p11 = por %p1015_p10, %p1014_p9 }
 0x1f0   : > { %p1012_p8 = pneg %p1011_p7 }
 0x1f1   : > { %p1018_p13 = por %p1017_p12, %p1016_p11 }
 0x1f3   : > { %p1019_p0 = pnand %p1018_p13, %p1012_p8 }
 0x1f5   : > { %1022 = shalt.err (!%p1019_p0)
}
 0x1f6   : > { %s1060_s26 = smov 128   ;;  %s1061_s6 = smov 8  }
 0x1f7   : > { %954 = dma.vmem_to_hbm [thread:$0]  (%p1130_p5), %s1282_s7, 2048, %s1280_s9, %s1288_s22, %s1060_s26, %s1060_s26, %s1061_s6  }
 0x1f8 PF: > { %p960_p1 = scmp.ge.s32.totalorder %s1057_s21, 2  ;;  %s690_s8 = sand.u32 1, %s1045_s18  }
 0x1f9   : > { %s691_s10 = scalar_lea.sflag [#allocation3], %s690_s8 }
 0x1fa   : > { %p957_p2 = pnand %p960_p1, %p1134_p6 }
 0x1fc   : > { %1040 = dma.done.wait (!%p957_p2), %s691_s10, 2048  }
 0x1fd   : > { %1042 = vsyncadd (!%p957_p2), %s691_s10, 4294965248  ;;  %p15_p3 = scmp.ge.s32.totalorder %s1117_s24, 4   ;;  %s1337_s18 = smov %s1049_s19 }
 0x1fe   : > { %s1338_s19 = smov %s1053_s20  ;;  %s1339_s20 = smov %s1128_s27 }
 0x1ff   : > { %s1340_s21 = smov %s1117_s24  ;;  %17 = sbr.rel (!%p15_p3) target bundleno = 3 (0x3), region = 75 }
 0x206   :  { %696 = vsyncpa [#allocation3], 1 }
 0x207   :  { %698 = vsyncpa [#allocation3 + $0x1], 1 }

</bundles_post_ra>
